<compile_context>
chip_gen: v6e
topology: v6e:2x2x1
jax: 0.10.0
libtpu: 0.0.40
codegen_flags: <defaults>
</compile_context>

<pallas_src>
import functools

import jax
import jax.numpy as jnp
import numpy as np
from jax.experimental import pallas as pl
from jax.experimental.pallas import tpu as pltpu

NEG_INF = -1e30  # large finite bias: avoids -inf -> NaN on fully-masked rows


# ---------------------------------------------------------------------------
# Helpers
# ---------------------------------------------------------------------------
def _vmem_capacity_bytes():
    """Best-effort VMEM capacity query (falls back to 128 MiB)."""
    try:
        info = pltpu.get_tpu_info()
        cap = getattr(info, "vmem_capacity_bytes", None)
        if cap:
            return int(cap)
    except Exception:
        pass
    return 128 * 1024 * 1024


def _pick_tile(total, target, align):
    """Largest divisor of `total` that is <= target and a multiple of `align`;
    falls back to the full extent (always a legal block size)."""
    if total <= target:
        return total
    t = (target // align) * align
    while t >= align:
        if total % t == 0:
            return t
        t -= align
    return total


def _const_spec(block_shape, index_map):
    """BlockSpec for blocks whose index never changes: single-buffered
    (double-buffering a constant block is pure wasted VMEM)."""
    if hasattr(pl, "Buffered"):
        return pl.BlockSpec(block_shape, index_map, pipeline_mode=pl.Buffered(1))
    return pl.BlockSpec(block_shape, index_map)


# ---------------------------------------------------------------------------
# Per-head projection kernel: x (t, D) @ W_h (D, dh) + b_h -> (t, dh) bf16
# ---------------------------------------------------------------------------
def _proj_head_kernel(x_ref, w_ref, b_ref, o_ref):
    x = x_ref[0]                                     # (t_tile, D)  bf16
    w = w_ref[0]                                     # (D, dh)      bf16
    y = jnp.dot(x, w, preferred_element_type=jnp.float32) + b_ref[0]
    o_ref[0, 0] = y.astype(o_ref.dtype)


def _project_heads(x, w_h, b_h, *, t_tile, vmem_limit):
    """x: (B, T, D) bf16; w_h: (H, D, dh) bf16; b_h: (H, 1, dh) f32
       -> (B, H, T, dh) bf16 head-major projection (scale may be pre-folded)."""
    B, T, D = x.shape
    H, _, dh = w_h.shape
    nt = T // t_tile
    return pl.pallas_call(
        _proj_head_kernel,
        out_shape=jax.ShapeDtypeStruct((B, H, T, dh), jnp.bfloat16),
        grid_spec=pltpu.PrefetchScalarGridSpec(
            num_scalar_prefetch=0,
            grid=(B, nt, H),          # H innermost: x block stays resident across heads
            in_specs=[
                pl.BlockSpec((1, t_tile, D), lambda b, t, h: (b, t, 0)),   # x
                pl.BlockSpec((1, D, dh),     lambda b, t, h: (h, 0, 0)),   # W_h
                pl.BlockSpec((1, 1, dh),     lambda b, t, h: (h, 0, 0)),   # b_h
            ],
            out_specs=pl.BlockSpec((1, 1, t_tile, dh),
                                   lambda b, t, h: (b, h, t, 0)),
        ),
        compiler_params=pltpu.CompilerParams(
            dimension_semantics=("parallel", "parallel", "arbitrary"),
            vmem_limit_bytes=vmem_limit,
        ),
    )(x, w_h, b_h)


# ---------------------------------------------------------------------------
# Flash-style attention kernel (grid = (B, q_tiles, k_tiles))
# ---------------------------------------------------------------------------
def _flash_mha_kernel(q_ref, k_ref, v_ref, qm_ref, km_ref, wo_ref, bo_ref,
                      out_ref, m_scr, l_scr, acc_scr, *, pad_idx, causality):
    qi = pl.program_id(1)
    ki = pl.program_id(2)
    nk = pl.num_programs(2)
    tq = q_ref.shape[2]
    tk = k_ref.shape[2]

    @pl.when(ki == 0)
    def _init():
        m_scr[...] = jnp.full_like(m_scr, NEG_INF)
        l_scr[...] = jnp.zeros_like(l_scr)
        acc_scr[...] = jnp.zeros_like(acc_scr)

    def _update():
        q3 = q_ref[0]                        # (H, tq, dh) bf16 (scale pre-folded)
        k3 = k_ref[0]                        # (H, tk, dh) bf16
        v3 = v_ref[0]                        # (H, tk, dh) bf16

        s = jnp.einsum('hqd,hkd->hqk', q3, k3,
                       preferred_element_type=jnp.float32)   # (H, tq, tk) f32

        # Fused additive bias: key padding + causal mask in ONE (tq, tk) tensor,
        # added to the scores with a single broadcast add over heads.
        kbias = jnp.where(km_ref[0] == jnp.float32(pad_idx),
                          jnp.float32(NEG_INF), jnp.float32(0.0))   # (1, tk)
        if causality:
            row = jax.lax.broadcasted_iota(jnp.int32, (tq, tk), 0) + qi * tq
            col = jax.lax.broadcasted_iota(jnp.int32, (tq, tk), 1) + ki * tk
            bias = jnp.where(col > row, jnp.float32(NEG_INF), kbias)  # (tq, tk)
        else:
            bias = kbias
        s = s + bias[None]

        # ---- online-softmax update ----
        m_prev = m_scr[...]                                   # (H, tq, 1)
        m_new = jnp.maximum(m_prev, jnp.max(s, axis=-1, keepdims=True))
        alpha = jnp.exp(m_prev - m_new)
        p = jnp.exp(s - m_new).astype(jnp.bfloat16)           # exp stored as bf16
        l_scr[...] = alpha * l_scr[...] + jnp.sum(
            p, axis=-1, keepdims=True, dtype=jnp.float32)     # f32 accumulation
        acc_scr[...] = alpha * acc_scr[...] + jnp.einsum(
            'hqk,hkd->hqd', p, v3, preferred_element_type=jnp.float32)
        m_scr[...] = m_new

    if causality:
        # Skip k tiles that lie entirely in the causally-masked future.
        pl.when(ki * tk <= qi * tq + (tq - 1))(_update)
    else:
        _update()

    @pl.when(ki == nk - 1)
    def _finalize():
        # Deferred normalization via EUP reciprocal (free slot).
        ctx = acc_scr[...] * pl.reciprocal(l_scr[...], approx=True)  # (H,tq,dh) f32
        # Output projection: batched-over-heads MXU matmuls + head sum
        # (no lane-concat relayout, no serialized per-head accumulator RMW).
        # TODO(synk): fold into one deep-K lax.dot_general contracting (H, dh)
        # when multi-dim contracting dot_general lowering is available.
        per_head = jnp.einsum('hqd,hdo->hqo', ctx.astype(jnp.bfloat16), wo_ref[...],
                              preferred_element_type=jnp.float32)    # (H, tq, Dq)
        out = jnp.sum(per_head, axis=0) + bo_ref[...]                # (tq, Dq)
        out = out * qm_ref[0]                                        # (tq, 1) bcast
        out_ref[0] = out.astype(out_ref.dtype)


# ---------------------------------------------------------------------------
# Wrapper
# ---------------------------------------------------------------------------
def multi_head_attention(query, key, query_mask, key_mask, params, *,
                         head_num, head_dims, pad_idx=0, causality=False,
                         value=None, q_tile=None, k_tile=None):
    """query: (B,Tq,Dq)  key: (B,Tk,Dk)  query_mask: (B,Tq)  key_mask: (B,Tk)."""
    if value is None:
        value = key
    B, Tq, Dq = query.shape
    _, Tk, Dk = key.shape
    H, dh = head_num, head_dims
    hid = H * dh

    wq_t, bq, wk_t, bk, wv_t, bv, wo_t, bo = params   # f32, W stored as (in, out)

    # ---- generation-aware defaults (v7x: 64 MiB VMEM; v5e/v6e: 128 MiB) ----
    vmem_cap = _vmem_capacity_bytes()
    if q_tile is None:
        q_tile = 128 if vmem_cap <= 64 * 1024 * 1024 else 256
    if k_tile is None:
        k_tile = 512
    vmem_limit = max(32 * 1024 * 1024,
                     min(vmem_cap * 5 // 8, 64 * 1024 * 1024))

    # ---- weights in head-major layout, bf16; softmax scale folded into Wq/bq ----
    scale = float(dh) ** (-0.5)

    def head_major_w(w, s=1.0):
        # (D, hid) -> (H, D, dh)
        D = w.shape[0]
        return (w * s).reshape(D, H, dh).transpose(1, 0, 2).astype(jnp.bfloat16)

    def head_major_b(b, s=1.0):
        return (b * s).reshape(H, 1, dh).astype(jnp.float32)

    wq_h, bq_h = head_major_w(wq_t, scale), head_major_b(bq, scale)
    wk_h, bk_h = head_major_w(wk_t), head_major_b(bk)
    wv_h, bv_h = head_major_w(wv_t), head_major_b(bv)
    # Output projection head-major: (H, dh, Dq); heads reduced inside the kernel.
    wo3 = wo_t.reshape(H, dh, Dq).astype(jnp.bfloat16)
    bo2 = bo.reshape(1, Dq).astype(jnp.float32)

    qb = query.astype(jnp.bfloat16)
    kb = key.astype(jnp.bfloat16)
    vb = value.astype(jnp.bfloat16)
    qm = query_mask.astype(jnp.float32).reshape(B, Tq, 1)   # Tq on sublanes
    km = key_mask.astype(jnp.float32).reshape(B, 1, Tk)

    # ---- tile selection (last-dim blocks must be x128 or full; sublane x8) ----
    tq_tile = _pick_tile(Tq, q_tile, 8)
    tk_tile = _pick_tile(Tk, k_tile, 128)
    proj_tq = _pick_tile(Tq, 512, 8)
    proj_tk = _pick_tile(Tk, 512, 8)

    # ---- Q/K/V projections OUTSIDE the attention loop (no qi==0 bubble) ----
    qp = _project_heads(qb, wq_h, bq_h, t_tile=proj_tq, vmem_limit=vmem_limit)
    kp = _project_heads(kb, wk_h, bk_h, t_tile=proj_tk, vmem_limit=vmem_limit)
    vp = _project_heads(vb, wv_h, bv_h, t_tile=proj_tk, vmem_limit=vmem_limit)

    n_q = Tq // tq_tile
    n_k = Tk // tk_tile

    kernel = functools.partial(
        _flash_mha_kernel, pad_idx=float(pad_idx), causality=causality)

    grid_spec = pltpu.PrefetchScalarGridSpec(
        num_scalar_prefetch=0,
        grid=(B, n_q, n_k),
        in_specs=[
            pl.BlockSpec((1, H, tq_tile, dh), lambda b, qi, ki: (b, 0, qi, 0)),  # Q
            pl.BlockSpec((1, H, tk_tile, dh), lambda b, qi, ki: (b, 0, ki, 0)),  # K
            pl.BlockSpec((1, H, tk_tile, dh), lambda b, qi, ki: (b, 0, ki, 0)),  # V
            pl.BlockSpec((1, tq_tile, 1),     lambda b, qi, ki: (b, qi, 0)),     # q mask
            pl.BlockSpec((1, 1, tk_tile),     lambda b, qi, ki: (b, 0, ki)),     # k mask
            _const_spec((H, dh, Dq),          lambda b, qi, ki: (0, 0, 0)),      # Wo
            _const_spec((1, Dq),              lambda b, qi, ki: (0, 0)),         # bo
        ],
        out_specs=pl.BlockSpec((1, tq_tile, Dq), lambda b, qi, ki: (b, qi, 0)),
        scratch_shapes=[
            pltpu.VMEM((H, tq_tile, 1), jnp.float32),    # m (running max)
            pltpu.VMEM((H, tq_tile, 1), jnp.float32),    # l (running denom)
            pltpu.VMEM((H, tq_tile, dh), jnp.float32),   # acc (running PV)
        ],
    )

    return pl.pallas_call(
        kernel,
        out_shape=jax.ShapeDtypeStruct((B, Tq, Dq), jnp.float32),
        grid_spec=grid_spec,
        # Accumulators are re-initialized at ki==0, so B and q axes are free to
        # be split across cores; the k (reduction) axis stays "arbitrary".
        compiler_params=pltpu.CompilerParams(
            dimension_semantics=("parallel", "parallel", "arbitrary"),
            vmem_limit_bytes=vmem_limit,
        ),
    )(qp, kp, vp, qm, km, wo3, bo2)


# ---------------------------------------------------------------------------
# Pure-JAX reference (mirror of the PyTorch forward) for verification
# ---------------------------------------------------------------------------
def _reference(query, key, query_mask, key_mask, params, *,
               head_num, head_dims, pad_idx=0, causality=False):
    wq_t, bq, wk_t, bk, wv_t, bv, wo_t, bo = params
    value = key
    B, Tq, Dq = query.shape
    Tk = key.shape[1]
    dh, H = head_dims, head_num

    qp = query @ wq_t + bq
    kp = key @ wk_t + bk
    vp = value @ wv_t + bv

    def split(x, T):
        return x.reshape(B, T, H, dh).transpose(0, 2, 1, 3)   # (B,H,T,dh)

    qh = split(qp, Tq) * (float(dh) ** -0.5)
    kh = split(kp, Tk)
    vh = split(vp, Tk)

    att = jnp.einsum('bhqd,bhkd->bhqk', qh, kh)
    kpad = (key_mask.astype(jnp.float32) == float(pad_idx))[:, None, None, :]
    att = jnp.where(kpad, -jnp.inf, att)
    if causality:
        cm = jnp.triu(jnp.ones((Tq, Tk), bool), k=1)[None, None]
        att = jnp.where(cm, -jnp.inf, att)
    att = jax.nn.softmax(att, axis=-1)
    out = jnp.einsum('bhqk,bhkd->bhqd', att, vh)
    out = out.transpose(0, 2, 1, 3).reshape(B, Tq, H * dh)
    out = out @ wo_t + bo
    out = out * query_mask.astype(jnp.float32)[:, :, None]
    return out


if __name__ == "__main__":
    # Small shapes that still exercise every grid axis: Tq=16 with q_tile=8
    # (2 q tiles), Tk=256 with k_tile=128 (2 k tiles -> online-softmax merge,
    # and the causal tile-skip path), plus a padded-keys batch element.
    B, Tq, Tk = 2, 16, 256
    query_dims, key_dims = 32, 32
    head_num = 4
    head_dims = query_dims // head_num
    hid = head_num * head_dims

    root = jax.random.PRNGKey(0)
    ks = jax.random.split(root, 10)

    query = jax.random.normal(ks[0], (B, Tq, query_dims), jnp.float32)
    key = jax.random.normal(ks[1], (B, Tk, key_dims), jnp.float32)

    # masks: 1 = keep, 0 = pad (pad_idx = 0).
    query_mask = jnp.ones((B, Tq), jnp.float32).at[0, -1].set(0.0)
    key_mask = jnp.ones((B, Tk), jnp.float32).at[1, -2:].set(0.0)

    def winit(k, shape):
        return 0.1 * jax.random.normal(k, shape, jnp.float32)

    params = (
        winit(ks[2], (query_dims, hid)), winit(ks[3], (hid,)),        # q proj
        winit(ks[4], (key_dims, hid)),   winit(ks[5], (hid,)),        # k proj
        winit(ks[6], (key_dims, hid)),   winit(ks[7], (hid,)),        # v proj
        winit(ks[8], (hid, query_dims)), winit(ks[9], (query_dims,)),  # out proj
    )

    for causal in (False, True):
        out = multi_head_attention(query, key, query_mask, key_mask, params,
                                   head_num=head_num, head_dims=head_dims,
                                   pad_idx=0, causality=causal,
                                   q_tile=8, k_tile=128)
        out = jax.block_until_ready(out)
        ref = _reference(query, key, query_mask, key_mask, params,
                         head_num=head_num, head_dims=head_dims,
                         pad_idx=0, causality=causal)
        # bf16 operands with f32 accumulation -> loose-but-tight-enough tolerance.
        np.testing.assert_allclose(np.asarray(out), np.asarray(ref),
                                   rtol=2e-2, atol=2e-2)

    print("KERNEL_OK")
</pallas_src>

<mosaic_0001>
module attributes {stable_mosaic.version = 11 : i64} {
  func.func @_proj_head_kernel(%arg0: i32, %arg1: i32, %arg2: i32, %arg3: memref<1x16x32xbf16, #tpu.memory_space<vmem>>, %arg4: memref<1x32x8xbf16, #tpu.memory_space<vmem>>, %arg5: memref<1x1x8xf32, #tpu.memory_space<vmem>>, %arg6: memref<1x1x16x8xbf16, #tpu.memory_space<vmem>>) attributes {dimension_semantics = [#tpu.dimension_semantics<parallel>, #tpu.dimension_semantics<parallel>, #tpu.dimension_semantics<arbitrary>], iteration_bounds = array<i64: 2, 1, 4>, scalar_prefetch = 0 : i64, scratch_operands = 0 : i64, tpu.core_type = #tpu.core_type<tc>, window_params = [{transform_indices = @transform_0, window_bounds = array<i64: 1, 16, 32>}, {transform_indices = @transform_1, window_bounds = array<i64: 1, 32, 8>}, {transform_indices = @transform_2, window_bounds = array<i64: 1, 1, 8>}, {transform_indices = @transform_3, window_bounds = array<i64: 1, 1, 16, 8>}]} {
    %c0 = arith.constant 0 : index
    %c0_0 = arith.constant 0 : index
    %c0_1 = arith.constant 0 : index
    %0 = vector.load %arg3[%c0, %c0_0, %c0_1] : memref<1x16x32xbf16, #tpu.memory_space<vmem>>, vector<1x16x32xbf16>
    %1 = vector.shape_cast %0 : vector<1x16x32xbf16> to vector<16x32xbf16>
    %c0_2 = arith.constant 0 : index
    %c0_3 = arith.constant 0 : index
    %c0_4 = arith.constant 0 : index
    %2 = vector.load %arg4[%c0_2, %c0_3, %c0_4] : memref<1x32x8xbf16, #tpu.memory_space<vmem>>, vector<1x32x8xbf16>
    %3 = vector.shape_cast %2 : vector<1x32x8xbf16> to vector<32x8xbf16>
    %cst = arith.constant dense<0.000000e+00> : vector<16x8xf32>
    %4 = tpu.matmul %1, %3, %cst {dimension_numbers = #tpu.dot_dimension_numbers<[1], [0], [0], [1], [0, 0, 1, 1], [], []>} : vector<16x32xbf16>, vector<32x8xbf16>, vector<16x8xf32> -> vector<16x8xf32>
    %c0_5 = arith.constant 0 : index
    %c0_6 = arith.constant 0 : index
    %c0_7 = arith.constant 0 : index
    %5 = vector.load %arg5[%c0_5, %c0_6, %c0_7] : memref<1x1x8xf32, #tpu.memory_space<vmem>>, vector<1x1x8xf32>
    %6 = vector.shape_cast %5 : vector<1x1x8xf32> to vector<1x8xf32>
    %7 = vector.broadcast %6 : vector<1x8xf32> to vector<16x8xf32>
    %8 = arith.addf %4, %7 : vector<16x8xf32>
    %9 = arith.truncf %8 : vector<16x8xf32> to vector<16x8xbf16>
    %c0_8 = arith.constant 0 : index
    %c0_9 = arith.constant 0 : index
    %c0_10 = arith.constant 0 : index
    %c0_11 = arith.constant 0 : index
    %10 = vector.load %arg6[%c0_8, %c0_9, %c0_10, %c0_11] : memref<1x1x16x8xbf16, #tpu.memory_space<vmem>>, vector<1x1x16x8xbf16>
    %11 = vector.shape_cast %10 : vector<1x1x16x8xbf16> to vector<16x8xbf16>
    %12 = vector.shape_cast %9 : vector<16x8xbf16> to vector<1x1x16x8xbf16>
    tpu.vector_store %arg6[%c0_8, %c0_9, %c0_10, %c0_11], %12 {strides = array<i32>} : memref<1x1x16x8xbf16, #tpu.memory_space<vmem>>, vector<1x1x16x8xbf16>,
    return
  }
  func.func @transform_0(%arg0: i32, %arg1: i32, %arg2: i32) -> (i32, i32, i32) {
    %c0_i32 = arith.constant 0 : i32
    %c0_i32_0 = arith.constant 0 : i32
    return %arg0, %arg1, %c0_i32 : i32, i32, i32
  }
  func.func @transform_1(%arg0: i32, %arg1: i32, %arg2: i32) -> (i32, i32, i32) {
    %c0_i32 = arith.constant 0 : i32
    %c0_i32_0 = arith.constant 0 : i32
    %c0_i32_1 = arith.constant 0 : i32
    return %arg2, %c0_i32, %c0_i32_0 : i32, i32, i32
  }
  func.func @transform_2(%arg0: i32, %arg1: i32, %arg2: i32) -> (i32, i32, i32) {
    %c0_i32 = arith.constant 0 : i32
    %c0_i32_0 = arith.constant 0 : i32
    %c0_i32_1 = arith.constant 0 : i32
    return %arg2, %c0_i32, %c0_i32_0 : i32, i32, i32
  }
  func.func @transform_3(%arg0: i32, %arg1: i32, %arg2: i32) -> (i32, i32, i32, i32) {
    %c0_i32 = arith.constant 0 : i32
    %c0_i32_0 = arith.constant 0 : i32
    return %arg0, %arg2, %arg1, %c0_i32 : i32, i32, i32, i32
  }
}

</mosaic_0001>

<bundles_post_ra>
// kernel: tpu_custom_call.1
= control target key start
LH: loop header
LB: loop body
LE: loop exit
PB: predicated region body
PF: predicated region fallthrough
CT: control target
= control target key end

     0   :  { %s621_s12 = smov 0   ;;  %s623_s13 = smov 0   ;;  %s678_s0 = inlined_call_operand.vmem [shape: bf16[2,16,32], index: 0, kind: input, shape index: {}]   ;;  %s679_s1 = inlined_call_operand.vmem [shape: bf16[4,32,8], index: 1, kind: input, shape index: {}]   ;;  %s680_s2 = inlined_call_operand.vmem [shape: f32[4,1,8], index: 2, kind: input, shape index: {}]   ;;  %s681_s3 = inlined_call_operand.vmem [shape: bf16[2,4,16,8], index: 3, kind: output, shape index: {}]  }
   0x1   :  { %s625_s14 = smov 0   ;;  %s627_s15 = smov 0  }
   0x2   :  { %s629_s16 = smov 0  }
   0x3 LB: > { %s25_s17 = sadd.s32 1, %s589_s14  ;;  %s32_s18 = sadd.s32 1, %s593_s15  ;;  %s597_s16 = sphi %s629_s16, %s13_s16   ;;  %s593_s15 = sphi %s627_s15, %s685_s15   ;;  %s589_s14 = sphi %s625_s14, %s684_s14   ;;  %s585_s13 = sphi %s623_s13, %s683_s13   ;;  %s581_s12 = sphi %s621_s12, %s682_s12  }
   0x4   : > { %p26_p0 = scmp.ge.s32.totalorder %s25_s17, 4  ;;  %p482_p1 = scmp.ge.s32.totalorder %s597_s16, 1 }
   0x5   : > { %p185_p2 = scmp.lt.s32.totalorder %s597_s16, 9 }
   0x6   : > { %s687_s17 = smov (%p26_p0, %s25_s17), 0  ;;  %s689_s18 = smov (!%p26_p0, %s32_s18), %s593_s15 }
   0x7   : > { %p186_p3 = pnand %p482_p1, %p185_p2  ;;  %p34_p4 = scmp.ge.s32.totalorder %s689_s18, 2 }
   0x8   : > { %p239_p5 = scmp.lt.s32.totalorder (!%p186_p3), %s581_s12, 3  ;;  %p230_p6 = scmp.lt.s32.totalorder (!%p186_p3), %s585_s13, 1 }
   0x9   : > { %s691_s18 = smov (%p34_p4, %s689_s18), 0  ;;  %189 = sbr.rel (%p186_p3) target bundleno = 227 (0xe3), region = 32 }
   0xe   : > { %v599_v0 = vmov 0.0   ;;  %vm600_vm0 = vmmov 0   ;;  %s693_s12 = smov (!%p239_p5, %s581_s12), 3  ;;  %s695_s13 = smov (!%p230_p6, %s585_s13), 1  ;;  %vm292_vm1 = vcmask 261120   ;;  %vm345_vm2 = vcmask 60416  }
   0xf   : > { %506 = vmatprep.subr.bf16.mxu0 %v599_v0  ;;  %510 = vmatprep.mubr.msk.bf16.mxu0 %vm600_vm0, %v599_v0  ;;  %s500_s19 = sshll.u32 %s693_s12, 4  ;;  %s499_s23 = sshll.u32 %s695_s13, 3 }
  0x10   : > { %s243_s22 = scalar_lea.vmem %s679_s1, %s500_s19  ;;  %s487_s24 = sshll.u32 %s693_s12, 1 }
  0x11   : > { %v556_v1 = vld [vmem:[%s243_s22 + $0x8] sm:$0xff]   ;;  %s237_s27 = scalar_lea.vmem %s678_s0, %s499_s23  ;;  %s257_s28 = sadd.s32 %s499_s23, %s487_s24  ;;  %v557_v2 = vld [vmem:[%s243_s22] sm:$0xff]  }
  0x12   : > { %507 = vmatpush3.bf16.msra.mxu0 %v556_v1  ;;  %v558_v3 = vld [vmem:[%s237_s27] sm:$0xff]   ;;  %s246_s4 = scalar_lea.vmem %s680_s2, %s693_s12  ;;  %s489_s5 = sshll.u32 %s257_s28, 2 }
  0x13   : > { %508 = vmatprep.subr.bf16.mxu0 %v599_v0  ;;  %v490_v4 = vld [vmem:[%s246_s4] ss:$0 sm:$0xff]  ;;  %s259_s8 = scalar_lea.vmem %s681_s3, %s489_s5 }
  0x16   : > { %509 = vmatpush3.bf16.msra.mxu0 %v557_v2 }
  0x19   : > { %511 = vmatmul.mubr.msk.bf16.vlgmr.msra.gmra.mxu0 %vm292_vm1, %v558_v3 }
  0xd9   : > { %v330_v5 = vpop.f32.mrf.mxu0 }
  0xda   : > { %v331_v6 = vadd.f32 %v490_v4, %v330_v5 }
  0xdb   : > { %v512_v7 = vpop.f32.mrf.mxu0 }
  0xdc   : > { %v501_v8 = vpack.c.bf16 %v331_v6, %v331_v6 }
  0xdd   : > { %v333_v9 = vpop.f32.mrf.mxu0 }
  0xde   : > { %346 = vst.msk [vmem:[%s259_s8] sm:$0xf] %vm345_vm2, %v501_v8  ;;  %v334_v10 = vadd.f32 %v490_v4, %v333_v9 }
  0xdf   : > { %v513_v11 = vpop.f32.mrf.mxu0 }
  0xe0   : > { %v502_v12 = vpack.c.bf16 %v334_v10, %v334_v10 }
  0xe2   : > { %347 = vst.msk [vmem:[%s259_s8 + $0x4] sm:$0xf] %vm345_vm2, %v502_v12 }
  0xe3 PF: > { %s13_s16 = sadd.s32 1, %s597_s16   ;;  %s682_s12 = smov %s589_s14 }
  0xe4   : > { %p10_p7 = scmp.ge.s32.totalorder %s13_s16, 10   ;;  %s683_s13 = smov %s593_s15 }
  0xe5   : > { %s684_s14 = smov %s687_s17  ;;  %s685_s15 = smov %s691_s18 }
  0xe6   :  { %12 = sbr.rel (!%p10_p7) target bundleno = 3 (0x3), region = 68 }

</bundles_post_ra>
